<compile_context>
chip_gen: v5e
topology: v5e:2x2
jax: 0.10.0
libtpu: 0.0.40
codegen_flags: <defaults>
</compile_context>

<pallas_src>
import functools

import jax
import jax.numpy as jnp
from jax.experimental import pallas as pl
from jax.experimental.pallas import tpu as pltpu

_BN_EPS = 1e-5
_LANE = 128


def _round_up(x, m):
    return ((x + m - 1) // m) * m


def _pad2(a, rows, cols):
    return jnp.pad(a, ((0, rows - a.shape[0]), (0, cols - a.shape[1])))


def _fused_mlp_kernel(*refs, n_layers, apply_bn, matmul_dtype):
    # refs layout (all 2-D, feature dims padded to multiples of 128):
    #   refs[0]                     x       (B, Din0_pad)            matmul_dtype
    #   refs[1 : 1+n]               w_i     (Din_i_pad, Dout_i_pad)  matmul_dtype
    #   if apply_bn:
    #     refs[1+n  : 1+2n]         gamma_i (1, Dout_i_pad)          f32
    #     refs[1+2n : 1+3n]         beta_i  (1, Dout_i_pad)          f32
    #   else:
    #     refs[1+n  : 1+2n]         bias_i  (1, Dout_i_pad)          f32
    #   refs[-1]                    out     (B, Dout_last_pad)       f32
    x_ref = refs[0]
    w_refs = refs[1:1 + n_layers]
    if apply_bn:
        g_refs = refs[1 + n_layers:1 + 2 * n_layers]
        be_refs = refs[1 + 2 * n_layers:1 + 3 * n_layers]
        b_refs = None
    else:
        b_refs = refs[1 + n_layers:1 + 2 * n_layers]
        g_refs = be_refs = None
    o_ref = refs[-1]

    h = x_ref[...]                                   # (B, Din0_pad), matmul dtype
    for i in range(n_layers):
        # MXU matmul: low-precision inputs, float32 accumulation.
        y = jnp.dot(h, w_refs[i][...], preferred_element_type=jnp.float32)
        if apply_bn:
            # Linear bias is omitted: it is exactly cancelled by the batch-mean
            # subtraction below (see wrapper). Training-mode BN, biased var.
            mean = jnp.mean(y, axis=0, keepdims=True)            # XLU reduce
            centered = y - mean
            var = jnp.mean(centered * centered, axis=0, keepdims=True)
            inv_std = jax.lax.rsqrt(var + _BN_EPS)               # EUP
            y = centered * inv_std * g_refs[i][...] + be_refs[i][...]
        else:
            y = y + b_refs[i][...]
        if i != n_layers - 1:
            y = jnp.maximum(y, 0.0)                              # ReLU (not on last)
            h = y.astype(matmul_dtype)
        else:
            h = y
    o_ref[...] = h.astype(o_ref.dtype)               # single lane-dense store


def fully_connected_mlp_forward(x, params, *, apply_batch_norm=True,
                                matmul_dtype=jnp.bfloat16):
    """Forward pass of FullyConnectedMLP as one fused Pallas kernel.

    x: any shape with leading batch dim; flattened to (B, input_dim).
    Every layer is Linear (+ BatchNorm1d if apply_batch_norm); ReLU on all but
    the final layer (matching `del model[-1]` in the PyTorch module).
    """
    batch = x.shape[0]
    h = x.reshape(batch, -1)
    n_layers = len(params)
    output_dim = params[-1][0].shape[1]

    # --- pad feature dims to lane-dense multiples of 128 ---------------------
    din0 = h.shape[1]
    din0_pad = _round_up(din0, _LANE)
    x_pad = _pad2(h.astype(jnp.float32), batch, din0_pad).astype(matmul_dtype)

    w_pads = []
    prev = din0
    for (w, _b, _g, _be) in params:
        din, dout = w.shape
        assert din == prev, "layer dimensions do not chain"
        w_pads.append(_pad2(w.astype(matmul_dtype),
                            _round_up(din, _LANE), _round_up(dout, _LANE)))
        prev = dout

    aux_pads = []
    if apply_batch_norm:
        for (w, _b, gamma, _be) in params:
            dp = _round_up(w.shape[1], _LANE)
            aux_pads.append(_pad2(gamma.reshape(1, -1).astype(jnp.float32), 1, dp))
        for (w, _b, _g, beta) in params:
            dp = _round_up(w.shape[1], _LANE)
            aux_pads.append(_pad2(beta.reshape(1, -1).astype(jnp.float32), 1, dp))
    else:
        for (w, b, _g, _be) in params:
            dp = _round_up(w.shape[1], _LANE)
            aux_pads.append(_pad2(b.reshape(1, -1).astype(jnp.float32), 1, dp))

    dout_last_pad = _round_up(output_dim, _LANE)
    inputs = [x_pad] + w_pads + aux_pads

    # --- cost / VMEM bookkeeping ---------------------------------------------
    flops = sum(2 * batch * w.shape[0] * w.shape[1] for w in w_pads)
    transcendentals = sum(w.shape[1] for w in w_pads) if apply_batch_norm else 0
    bytes_accessed = (sum(int(a.size) * a.dtype.itemsize for a in inputs)
                      + batch * dout_last_pad * 4)

    vmem_bytes = int(bytes_accessed)
    if vmem_bytes > 40 * 1024 * 1024:
        # TODO(synk): add a Dout/K-tiled grid path (VMEM f32 accumulator,
        # pl.when init/finalize, "parallel" Dout axis) for layer widths whose
        # weights do not fit on-chip; the fused path keeps everything resident.
        raise NotImplementedError(
            "fused MLP kernel requires weights + activations to fit in VMEM")
    compiler_params = None
    if vmem_bytes > 16 * 1024 * 1024:
        compiler_params = pltpu.CompilerParams(
            vmem_limit_bytes=min(vmem_bytes + (8 << 20), 56 * 1024 * 1024))

    kernel = functools.partial(_fused_mlp_kernel, n_layers=n_layers,
                               apply_bn=apply_batch_norm,
                               matmul_dtype=matmul_dtype)

    out_pad = pl.pallas_call(
        kernel,
        out_shape=jax.ShapeDtypeStruct((batch, dout_last_pad), jnp.float32),
        in_specs=[pl.BlockSpec(a.shape, lambda: (0, 0)) for a in inputs],
        out_specs=pl.BlockSpec((batch, dout_last_pad), lambda: (0, 0)),
        cost_estimate=pl.CostEstimate(flops=int(flops),
                                      transcendentals=int(transcendentals),
                                      bytes_accessed=int(bytes_accessed)),
        compiler_params=compiler_params,
    )(*inputs)

    return out_pad[:, :output_dim]


def init_mlp_params(key, input_dim, hiddens, output_dim, *,
                    weight_dtype=jnp.bfloat16):
    """Deterministic init mirroring the PyTorch module's layer shapes.

    Linear weights ~ U(-1/sqrt(fan_in), 1/sqrt(fan_in)) (PyTorch default),
    stored as (in, out) in bf16 (HBM bytes halved); bias in f32;
    BatchNorm gamma=1, beta=0 (PyTorch defaults at construction).
    """
    inputs = [input_dim] + list(hiddens)
    outputs = list(hiddens) + [output_dim]
    params = []
    for inp, outp in zip(inputs, outputs):
        key, kw, kb = jax.random.split(key, 3)
        bound = 1.0 / (inp ** 0.5)
        w = jax.random.uniform(kw, (inp, outp), jnp.float32,
                               -bound, bound).astype(weight_dtype)
        b = jax.random.uniform(kb, (outp,), jnp.float32, -bound, bound)
        gamma = jnp.ones((outp,), jnp.float32)
        beta = jnp.zeros((outp,), jnp.float32)
        params.append((w, b, gamma, beta))
    return params


def _reference_forward(x, params, *, apply_batch_norm=True,
                       matmul_dtype=jnp.bfloat16):
    # Pure-JAX reference, faithful to the PyTorch module (bias always added);
    # uses the same bf16-matmul / f32-accumulate precision as the kernel.
    B = x.shape[0]
    h = x.reshape(B, -1).astype(jnp.float32)
    n = len(params)
    for i, (w, b, gamma, beta) in enumerate(params):
        y = jnp.dot(h.astype(matmul_dtype), w.astype(matmul_dtype),
                    preferred_element_type=jnp.float32)
        y = y + b.astype(jnp.float32)
        if apply_batch_norm:
            mean = jnp.mean(y, axis=0, keepdims=True)
            var = jnp.mean((y - mean) ** 2, axis=0, keepdims=True)
            y = (y - mean) * jax.lax.rsqrt(var + _BN_EPS) * gamma + beta
        if i != n - 1:
            y = jnp.maximum(y, 0.0)
        h = y
    return h


if __name__ == "__main__":
    key = jax.random.PRNGKey(0)
    kx, kp = jax.random.split(key)

    # Small shapes consistent with the module: x of shape (B, 4, 16) is
    # flattened to (B, 64) by forward's .view(batch_size, -1).
    batch, c, s = 8, 4, 16
    input_dim = c * s
    hiddens = [32, 32]
    output_dim = 16

    x = jax.random.normal(kx, (batch, c, s), jnp.float32)
    params = init_mlp_params(kp, input_dim, hiddens, output_dim)

    # BN path (default module configuration), jitted end to end.
    fwd = jax.jit(functools.partial(fully_connected_mlp_forward,
                                    apply_batch_norm=True))
    out = jax.block_until_ready(fwd(x, params))
    ref = _reference_forward(x, params, apply_batch_norm=True)
    assert out.shape == (batch, output_dim)
    assert jnp.allclose(out, ref, atol=1e-2, rtol=1e-2), "BN path mismatch vs reference"

    # No-BN path (apply_batch_norm=False) to exercise the bias branch.
    out_nobn = jax.block_until_ready(
        fully_connected_mlp_forward(x, params, apply_batch_norm=False))
    ref_nobn = _reference_forward(x, params, apply_batch_norm=False)
    assert jnp.allclose(out_nobn, ref_nobn, atol=1e-2, rtol=1e-2), "no-BN path mismatch"

    print("KERNEL_OK")
</pallas_src>

<mosaic_0001>
module attributes {stable_mosaic.version = 11 : i64} {
  func.func @_fused_mlp_kernel(%arg0: memref<8x128xbf16, #tpu.memory_space<vmem>>, %arg1: memref<128x128xbf16, #tpu.memory_space<vmem>>, %arg2: memref<128x128xbf16, #tpu.memory_space<vmem>>, %arg3: memref<128x128xbf16, #tpu.memory_space<vmem>>, %arg4: memref<1x128xf32, #tpu.memory_space<vmem>>, %arg5: memref<1x128xf32, #tpu.memory_space<vmem>>, %arg6: memref<1x128xf32, #tpu.memory_space<vmem>>, %arg7: memref<1x128xf32, #tpu.memory_space<vmem>>, %arg8: memref<1x128xf32, #tpu.memory_space<vmem>>, %arg9: memref<1x128xf32, #tpu.memory_space<vmem>>, %arg10: memref<8x128xf32, #tpu.memory_space<vmem>>) attributes {dimension_semantics = [], scalar_prefetch = 0 : i64, scratch_operands = 0 : i64, tpu.core_type = #tpu.core_type<tc>} {
    %c0 = arith.constant 0 : index
    %c0_0 = arith.constant 0 : index
    %0 = vector.load %arg0[%c0, %c0_0] : memref<8x128xbf16, #tpu.memory_space<vmem>>, vector<8x128xbf16>
    %c0_1 = arith.constant 0 : index
    %c0_2 = arith.constant 0 : index
    %1 = vector.load %arg1[%c0_1, %c0_2] : memref<128x128xbf16, #tpu.memory_space<vmem>>, vector<128x128xbf16>
    %cst = arith.constant dense<0.000000e+00> : vector<8x128xf32>
    %2 = tpu.matmul %0, %1, %cst {dimension_numbers = #tpu.dot_dimension_numbers<[1], [0], [0], [1], [0, 0, 1, 1], [], []>} : vector<8x128xbf16>, vector<128x128xbf16>, vector<8x128xf32> -> vector<8x128xf32>
    %cst_3 = arith.constant dense<0.000000e+00> : vector<128xf32>
    %3 = vector.multi_reduction <add>, %2, %cst_3 [0] : vector<8x128xf32> to vector<128xf32>
    %4 = vector.shape_cast %3 : vector<128xf32> to vector<1x128xf32>
    %cst_4 = arith.constant 8.000000e+00 : f32
    %5 = vector.broadcast %cst_4 : f32 to vector<1x128xf32>
    %6 = arith.divf %4, %5 : vector<1x128xf32>
    %7 = vector.broadcast %6 : vector<1x128xf32> to vector<8x128xf32>
    %8 = arith.subf %2, %7 : vector<8x128xf32>
    %9 = arith.mulf %8, %8 : vector<8x128xf32>
    %cst_5 = arith.constant dense<0.000000e+00> : vector<128xf32>
    %10 = vector.multi_reduction <add>, %9, %cst_5 [0] : vector<8x128xf32> to vector<128xf32>
    %11 = vector.shape_cast %10 : vector<128xf32> to vector<1x128xf32>
    %cst_6 = arith.constant 8.000000e+00 : f32
    %12 = vector.broadcast %cst_6 : f32 to vector<1x128xf32>
    %13 = arith.divf %11, %12 : vector<1x128xf32>
    %cst_7 = arith.constant 9.99999974E-6 : f32
    %14 = vector.broadcast %cst_7 : f32 to vector<1x128xf32>
    %15 = arith.addf %13, %14 : vector<1x128xf32>
    %16 = math.rsqrt %15 : vector<1x128xf32>
    %17 = vector.broadcast %16 : vector<1x128xf32> to vector<8x128xf32>
    %18 = arith.mulf %8, %17 : vector<8x128xf32>
    %c0_8 = arith.constant 0 : index
    %c0_9 = arith.constant 0 : index
    %19 = vector.load %arg4[%c0_8, %c0_9] : memref<1x128xf32, #tpu.memory_space<vmem>>, vector<1x128xf32>
    %20 = vector.broadcast %19 : vector<1x128xf32> to vector<8x128xf32>
    %21 = arith.mulf %18, %20 : vector<8x128xf32>
    %c0_10 = arith.constant 0 : index
    %c0_11 = arith.constant 0 : index
    %22 = vector.load %arg7[%c0_10, %c0_11] : memref<1x128xf32, #tpu.memory_space<vmem>>, vector<1x128xf32>
    %23 = vector.broadcast %22 : vector<1x128xf32> to vector<8x128xf32>
    %24 = arith.addf %21, %23 : vector<8x128xf32>
    %cst_12 = arith.constant 0.000000e+00 : f32
    %25 = vector.broadcast %cst_12 : f32 to vector<8x128xf32>
    %26 = arith.maximumf %24, %25 : vector<8x128xf32>
    %27 = arith.truncf %26 : vector<8x128xf32> to vector<8x128xbf16>
    %c0_13 = arith.constant 0 : index
    %c0_14 = arith.constant 0 : index
    %28 = vector.load %arg2[%c0_13, %c0_14] : memref<128x128xbf16, #tpu.memory_space<vmem>>, vector<128x128xbf16>
    %cst_15 = arith.constant dense<0.000000e+00> : vector<8x128xf32>
    %29 = tpu.matmul %27, %28, %cst_15 {dimension_numbers = #tpu.dot_dimension_numbers<[1], [0], [0], [1], [0, 0, 1, 1], [], []>} : vector<8x128xbf16>, vector<128x128xbf16>, vector<8x128xf32> -> vector<8x128xf32>
    %cst_16 = arith.constant dense<0.000000e+00> : vector<128xf32>
    %30 = vector.multi_reduction <add>, %29, %cst_16 [0] : vector<8x128xf32> to vector<128xf32>
    %31 = vector.shape_cast %30 : vector<128xf32> to vector<1x128xf32>
    %cst_17 = arith.constant 8.000000e+00 : f32
    %32 = vector.broadcast %cst_17 : f32 to vector<1x128xf32>
    %33 = arith.divf %31, %32 : vector<1x128xf32>
    %34 = vector.broadcast %33 : vector<1x128xf32> to vector<8x128xf32>
    %35 = arith.subf %29, %34 : vector<8x128xf32>
    %36 = arith.mulf %35, %35 : vector<8x128xf32>
    %cst_18 = arith.constant dense<0.000000e+00> : vector<128xf32>
    %37 = vector.multi_reduction <add>, %36, %cst_18 [0] : vector<8x128xf32> to vector<128xf32>
    %38 = vector.shape_cast %37 : vector<128xf32> to vector<1x128xf32>
    %cst_19 = arith.constant 8.000000e+00 : f32
    %39 = vector.broadcast %cst_19 : f32 to vector<1x128xf32>
    %40 = arith.divf %38, %39 : vector<1x128xf32>
    %cst_20 = arith.constant 9.99999974E-6 : f32
    %41 = vector.broadcast %cst_20 : f32 to vector<1x128xf32>
    %42 = arith.addf %40, %41 : vector<1x128xf32>
    %43 = math.rsqrt %42 : vector<1x128xf32>
    %44 = vector.broadcast %43 : vector<1x128xf32> to vector<8x128xf32>
    %45 = arith.mulf %35, %44 : vector<8x128xf32>
    %c0_21 = arith.constant 0 : index
    %c0_22 = arith.constant 0 : index
    %46 = vector.load %arg5[%c0_21, %c0_22] : memref<1x128xf32, #tpu.memory_space<vmem>>, vector<1x128xf32>
    %47 = vector.broadcast %46 : vector<1x128xf32> to vector<8x128xf32>
    %48 = arith.mulf %45, %47 : vector<8x128xf32>
    %c0_23 = arith.constant 0 : index
    %c0_24 = arith.constant 0 : index
    %49 = vector.load %arg8[%c0_23, %c0_24] : memref<1x128xf32, #tpu.memory_space<vmem>>, vector<1x128xf32>
    %50 = vector.broadcast %49 : vector<1x128xf32> to vector<8x128xf32>
    %51 = arith.addf %48, %50 : vector<8x128xf32>
    %cst_25 = arith.constant 0.000000e+00 : f32
    %52 = vector.broadcast %cst_25 : f32 to vector<8x128xf32>
    %53 = arith.maximumf %51, %52 : vector<8x128xf32>
    %54 = arith.truncf %53 : vector<8x128xf32> to vector<8x128xbf16>
    %c0_26 = arith.constant 0 : index
    %c0_27 = arith.constant 0 : index
    %55 = vector.load %arg3[%c0_26, %c0_27] : memref<128x128xbf16, #tpu.memory_space<vmem>>, vector<128x128xbf16>
    %cst_28 = arith.constant dense<0.000000e+00> : vector<8x128xf32>
    %56 = tpu.matmul %54, %55, %cst_28 {dimension_numbers = #tpu.dot_dimension_numbers<[1], [0], [0], [1], [0, 0, 1, 1], [], []>} : vector<8x128xbf16>, vector<128x128xbf16>, vector<8x128xf32> -> vector<8x128xf32>
    %cst_29 = arith.constant dense<0.000000e+00> : vector<128xf32>
    %57 = vector.multi_reduction <add>, %56, %cst_29 [0] : vector<8x128xf32> to vector<128xf32>
    %58 = vector.shape_cast %57 : vector<128xf32> to vector<1x128xf32>
    %cst_30 = arith.constant 8.000000e+00 : f32
    %59 = vector.broadcast %cst_30 : f32 to vector<1x128xf32>
    %60 = arith.divf %58, %59 : vector<1x128xf32>
    %61 = vector.broadcast %60 : vector<1x128xf32> to vector<8x128xf32>
    %62 = arith.subf %56, %61 : vector<8x128xf32>
    %63 = arith.mulf %62, %62 : vector<8x128xf32>
    %cst_31 = arith.constant dense<0.000000e+00> : vector<128xf32>
    %64 = vector.multi_reduction <add>, %63, %cst_31 [0] : vector<8x128xf32> to vector<128xf32>
    %65 = vector.shape_cast %64 : vector<128xf32> to vector<1x128xf32>
    %cst_32 = arith.constant 8.000000e+00 : f32
    %66 = vector.broadcast %cst_32 : f32 to vector<1x128xf32>
    %67 = arith.divf %65, %66 : vector<1x128xf32>
    %cst_33 = arith.constant 9.99999974E-6 : f32
    %68 = vector.broadcast %cst_33 : f32 to vector<1x128xf32>
    %69 = arith.addf %67, %68 : vector<1x128xf32>
    %70 = math.rsqrt %69 : vector<1x128xf32>
    %71 = vector.broadcast %70 : vector<1x128xf32> to vector<8x128xf32>
    %72 = arith.mulf %62, %71 : vector<8x128xf32>
    %c0_34 = arith.constant 0 : index
    %c0_35 = arith.constant 0 : index
    %73 = vector.load %arg6[%c0_34, %c0_35] : memref<1x128xf32, #tpu.memory_space<vmem>>, vector<1x128xf32>
    %74 = vector.broadcast %73 : vector<1x128xf32> to vector<8x128xf32>
    %75 = arith.mulf %72, %74 : vector<8x128xf32>
    %c0_36 = arith.constant 0 : index
    %c0_37 = arith.constant 0 : index
    %76 = vector.load %arg9[%c0_36, %c0_37] : memref<1x128xf32, #tpu.memory_space<vmem>>, vector<1x128xf32>
    %77 = vector.broadcast %76 : vector<1x128xf32> to vector<8x128xf32>
    %78 = arith.addf %75, %77 : vector<8x128xf32>
    %c0_38 = arith.constant 0 : index
    %c0_39 = arith.constant 0 : index
    %79 = vector.load %arg10[%c0_38, %c0_39] : memref<8x128xf32, #tpu.memory_space<vmem>>, vector<8x128xf32>
    tpu.vector_store %arg10[%c0_38, %c0_39], %78 {strides = array<i32>} : memref<8x128xf32, #tpu.memory_space<vmem>>, vector<8x128xf32>,
    return
  }
}

</mosaic_0001>

<bundles_post_ra>
// kernel: fully_connected_mlp_forward.1
= control target key start
LH: loop header
LB: loop body
LE: loop exit
PB: predicated region body
PF: predicated region fallthrough
CT: control target
= control target key end

     0   :  { %s733_s0 = inlined_call_operand.vmem [shape: bf16[8,128], index: 0, kind: input, shape index: {}]   ;;  %s734_s1 = inlined_call_operand.vmem [shape: bf16[128,128], index: 1, kind: input, shape index: {}]   ;;  %s735_s2 = inlined_call_operand.vmem [shape: bf16[128,128], index: 2, kind: input, shape index: {}]   ;;  %s736_s3 = inlined_call_operand.vmem [shape: bf16[128,128], index: 3, kind: input, shape index: {}]   ;;  %s737_s4 = inlined_call_operand.vmem [shape: f32[1,128], index: 4, kind: input, shape index: {}]   ;;  %s738_s5 = inlined_call_operand.vmem [shape: f32[1,128], index: 5, kind: input, shape index: {}]   ;;  %s739_s6 = inlined_call_operand.vmem [shape: f32[1,128], index: 6, kind: input, shape index: {}]   ;;  %s740_s7 = inlined_call_operand.vmem [shape: f32[1,128], index: 7, kind: input, shape index: {}]   ;;  %s741_s8 = inlined_call_operand.vmem [shape: f32[1,128], index: 8, kind: input, shape index: {}]   ;;  %s742_s9 = inlined_call_operand.vmem [shape: f32[1,128], index: 9, kind: input, shape index: {}]   ;;  %s743_s10 = inlined_call_operand.hbm [shape: f32[8,128], index: 10, kind: output, shape index: {}]  }
   0x1   :  { %v513_v0 = vld [vmem:[%s734_s1 + $0x38] sm:$0xff]  ;;  %v512_v1 = vld [vmem:[%s734_s1 + $0x30] sm:$0xff] }
   0x2   :  { %101 = vmatpush.bf16.msra.mxu0 %v513_v0 }
   0x3   :  { %15 = vsyncpa [#allocation3], 0  ;;  %v511_v2 = vld [vmem:[%s734_s1 + $0x28] sm:$0xff]  ;;  %v510_v3 = vld [vmem:[%s734_s1 + $0x20] sm:$0xff]  ;;  %v572_v9 = vmov 8.0   ;;  %s573_s25 = smov [#allocation2]  }
   0x4   :  { %v509_v4 = vld [vmem:[%s734_s1 + $0x18] sm:$0xff]  ;;  %v508_v5 = vld [vmem:[%s734_s1 + $0x10] sm:$0xff]  ;;  %v507_v6 = vld [vmem:[%s734_s1 + $0x8] sm:$0xff]  ;;  %538 = vrcp.f32 %v572_v9  ;;  %s399_s26 = sshll.u32 %s573_s25, 4  ;;  %s401_s28 = sshll.u32 %s743_s10, 4  ;;  %s400_s26 = int_to_ptr.vmem [resolvable:$true] %s399_s26  ;;  %s402_s28 = int_to_ptr.hbm [resolvable:$true] %s401_s28 }
   0x5   :  { %v506_v7 = vld [vmem:[%s734_s1] sm:$0xff]  ;;  %v521_v13 = vld [vmem:[%s735_s2 + $0x38] sm:$0xff]  ;;  %v520_v17 = vld [vmem:[%s735_s2 + $0x30] sm:$0xff] }
   0x6   :  { %102 = vmatpush.bf16.msra.mxu0 %v512_v1  ;;  %v36_v8 = vld [vmem:[%s733_s0] sm:$0xf]  ;;  %225 = vmatpush.bf16.msra.mxu1 %v521_v13  ;;  %v519_v21 = vld [vmem:[%s735_s2 + $0x28] sm:$0xff]  ;;  %v517_v29 = vld [vmem:[%s735_s2 + $0x18] sm:$0xff] }
   0x7   :  { %v518_v26 = vld [vmem:[%s735_s2 + $0x20] sm:$0xff]  ;;  %v516_v32 = vld [vmem:[%s735_s2 + $0x10] sm:$0xff]  ;;  %v515_v35 = vld [vmem:[%s735_s2 + $0x8] sm:$0xff] }
   0x8   :  { %v514_v37 = vld [vmem:[%s735_s2] sm:$0xff]  ;;  %v529_v57 = vld [vmem:[%s736_s3 + $0x38] sm:$0xff]  ;;  %v528_v60 = vld [vmem:[%s736_s3 + $0x30] sm:$0xff] }
   0x9   :  { %v532_v49 = vld [vmem:[%s737_s4] ss:$0 sm:$0xff]  ;;  %342 = vmatpush.bf16.msra.mxu2 %v529_v57  ;;  %v527_v63 = vld [vmem:[%s736_s3 + $0x28] sm:$0xff]  ;;  %v524_v9 = vld [vmem:[%s736_s3 + $0x10] sm:$0xff] }
   0xa   :  { %103 = vmatpush.bf16.msra.mxu0 %v511_v2  ;;  %v539_v10 = vpop.eup %538  ;;  %226 = vmatpush.bf16.msra.mxu1 %v520_v17  ;;  %v533_v52 = vld [vmem:[%s740_s7] ss:$0 sm:$0xff] }
   0xb   :  { %v121_v11 = vmul.f32 8.0, %v539_v10  ;;  %vm125_vm0 = vweird.f32 %v539_v10 }
   0xd   :  { %v122_v12 = vsub.f32 1.0, %v121_v11  ;;  %343 = vmatpush.bf16.msra.mxu2 %v528_v60  ;;  %v536_v60 = vld [vmem:[%s739_s6] ss:$0 sm:$0xff] }
   0xe   :  { %104 = vmatpush.bf16.msra.mxu0 %v510_v3  ;;  %227 = vmatpush.bf16.msra.mxu1 %v519_v21  ;;  %v526_v3 = vld [vmem:[%s736_s3 + $0x20] sm:$0xff] }
   0xf   :  { %v123_v16 = vmul.f32 %v539_v10, %v122_v12  ;;  %v523_v12 = vld [vmem:[%s736_s3 + $0x8] sm:$0xff] }
  0x11   :  { %v124_v20 = vadd.f32 %v539_v10, %v123_v16  ;;  %344 = vmatpush.bf16.msra.mxu2 %v527_v63 }
  0x12   :  { %105 = vmatpush.bf16.msra.mxu0 %v509_v4  ;;  %228 = vmatpush.bf16.msra.mxu1 %v518_v26 }
  0x13   :  { %v665_v25 = vsel %vm125_vm0, %v539_v10, %v124_v20 }
  0x15   :  { %345 = vmatpush.bf16.msra.mxu2 %v526_v3 }
  0x16   :  { %106 = vmatpush.bf16.msra.mxu0 %v508_v5  ;;  %229 = vmatpush.bf16.msra.mxu1 %v517_v29 }
  0x1a   :  { %107 = vmatpush.bf16.msra.mxu0 %v507_v6  ;;  %230 = vmatpush.bf16.msra.mxu1 %v516_v32  ;;  %v525_v6 = vld [vmem:[%s736_s3 + $0x18] sm:$0xff] }
  0x1b   :  { %346 = vmatpush.bf16.msra.mxu2 %v525_v6 }
  0x1e   :  { %108 = vmatpush.bf16.msra.mxu0 %v506_v7  ;;  %231 = vmatpush.bf16.msra.mxu1 %v515_v35 }
  0x1f   :  { %347 = vmatpush.bf16.msra.mxu2 %v524_v9 }
  0x21   :  { %109 = vmatmul.bf16.vlgmr.msra.gmra.mxu0 %v36_v8 }
  0x22   :  { %232 = vmatpush.bf16.msra.mxu1 %v514_v37 }
  0x23   :  { %348 = vmatpush.bf16.msra.mxu2 %v523_v12 }
  0x9e   :  { %v110_v14 = vpop.f32.mrf.mxu0 }
  0x9f   :  { %v114_v15 = vrot.slane %v110_v14, 4 }
  0xa1   :  { %v115_v18 = vadd.f32 %v114_v15, %v110_v14 }
  0xa3   :  { %v116_v19 = vrot.slane %v115_v18, 2 }
  0xa5   :  { %v117_v22 = vadd.f32 %v116_v19, %v115_v18 }
  0xa6   :  { %v112_v23 = vpop.f32.mrf.mxu0 }
  0xa7   :  { %v118_v24 = vrot.slane %v117_v22, 1 }
  0xa9   :  { %v119_v27 = vadd.f32 %v118_v24, %v117_v22 }
  0xab   :  { %v127_v28 = vmul.f32 %v665_v25, %v119_v27  ;;  %v534_v27 = vld [vmem:[%s738_s5] ss:$0 sm:$0xff] }
  0xad   :  { %v128_v30 = vsub.f32 %v110_v14, %v127_v28  ;;  %v522_v14 = vld [vmem:[%s736_s3] sm:$0xff] }
  0xae   :  { %349 = vmatpush.bf16.msra.mxu2 %v522_v14 }
  0xaf   :  { %v129_v31 = vmul.f32 %v128_v30, %v128_v30 }
  0xb1   :  { %v130_v33 = vrot.slane %v129_v31, 4 }
  0xb3   :  { %v131_v34 = vadd.f32 %v130_v33, %v129_v31 }
  0xb5   :  { %v132_v36 = vrot.slane %v131_v34, 2 }
  0xb7   :  { %v133_v38 = vadd.f32 %v132_v36, %v131_v34 }
  0xb9   :  { %v134_v39 = vrot.slane %v133_v38, 1 }
  0xbb   :  { %v135_v40 = vadd.f32 %v134_v39, %v133_v38 }
  0xbd   :  { %v136_v41 = vmul.f32 %v135_v40, %v665_v25 }
  0xbf   :  { %v137_v42 = vadd.f32 1e-05, %v136_v41 }
  0xc1   :  { %540 = vrsqrt.f32 %v137_v42  ;;  %vm144_vm2 = vweird.f32 %v137_v42 }
  0xc7   :  { %v541_v43 = vpop.eup %540 }
  0xc8   :  { %v139_v44 = vmul.f32 %v541_v43, %v137_v42  ;;  %vm145_vm1 = vweird.f32 %v541_v43 }
  0xc9   :  { %vm146_vm3 = vmor %vm144_vm2, %vm145_vm1 }
  0xca   :  { %v140_v45 = vmul.f32 %v541_v43, %v139_v44 }
  0xcc   :  { %v141_v46 = vmul.f32 0.5, %v140_v45 }
  0xce   :  { %v142_v47 = vsub.f32 1.5, %v141_v46 }
  0xd0   :  { %v143_v48 = vmul.f32 %v541_v43, %v142_v47 }
  0xd2   :  { %v147_v50 = vsel %vm146_vm3, %v541_v43, %v143_v48 }
  0xd3   :  { %v148_v51 = vmul.f32 %v147_v50, %v128_v30  ;;  %v535_v30 = vld [vmem:[%s741_s8] ss:$0 sm:$0xff] }
  0xd5   :  { %v153_v53 = vmul.f32 %v532_v49, %v148_v51 }
  0xd7   :  { %v158_v54 = vadd.f32 %v533_v52, %v153_v53 }
  0xd9   :  { %v159_v55 = vmax.f32 %v158_v54, 0.0 }
  0xdb   :  { %v160_v56 = vpack.c.bf16 %v159_v55, %v159_v55 }
  0xdd   :  { %233 = vmatmul.bf16.vlgmr.msra.gmra.mxu1 %v160_v56 }
 0x15a   :  { %v234_v58 = vpop.f32.mrf.mxu1 }
 0x15b   :  { %v238_v59 = vrot.slane %v234_v58, 4 }
 0x15d   :  { %v239_v61 = vadd.f32 %v238_v59, %v234_v58 }
 0x15f   :  { %v240_v62 = vrot.slane %v239_v61, 2 }
 0x161   :  { %v241_v0 = vadd.f32 %v240_v62, %v239_v61 }
 0x162   :  { %v236_v1 = vpop.f32.mrf.mxu1 }
 0x163   :  { %v242_v2 = vrot.slane %v241_v0, 1 }
 0x165   :  { %v243_v4 = vadd.f32 %v242_v2, %v241_v0 }
 0x167   :  { %v244_v5 = vmul.f32 %v243_v4, %v665_v25 }
 0x169   :  { %v245_v7 = vsub.f32 %v234_v58, %v244_v5 }
 0x16b   :  { %v246_v8 = vmul.f32 %v245_v7, %v245_v7 }
 0x16d   :  { %v247_v10 = vrot.slane %v246_v8, 4 }
 0x16f   :  { %v248_v11 = vadd.f32 %v247_v10, %v246_v8 }
 0x171   :  { %v249_v13 = vrot.slane %v248_v11, 2 }
 0x173   :  { %v250_v15 = vadd.f32 %v249_v13, %v248_v11 }
 0x175   :  { %v251_v16 = vrot.slane %v250_v15, 1 }
 0x177   :  { %v252_v17 = vadd.f32 %v251_v16, %v250_v15 }
 0x179   :  { %v253_v18 = vmul.f32 %v252_v17, %v665_v25 }
 0x17b   :  { %v254_v19 = vadd.f32 1e-05, %v253_v18 }
 0x17d   :  { %542 = vrsqrt.f32 %v254_v19  ;;  %vm261_vm5 = vweird.f32 %v254_v19 }
 0x183   :  { %v543_v20 = vpop.eup %542 }
 0x184   :  { %v256_v21 = vmul.f32 %v543_v20, %v254_v19  ;;  %vm262_vm4 = vweird.f32 %v543_v20 }
 0x185   :  { %vm263_vm6 = vmor %vm261_vm5, %vm262_vm4 }
 0x186   :  { %v257_v22 = vmul.f32 %v543_v20, %v256_v21 }
 0x188   :  { %v258_v23 = vmul.f32 0.5, %v257_v22 }
 0x18a   :  { %v259_v24 = vsub.f32 1.5, %v258_v23 }
 0x18c   :  { %v260_v26 = vmul.f32 %v543_v20, %v259_v24 }
 0x18e   :  { %v264_v28 = vsel %vm263_vm6, %v543_v20, %v260_v26 }
 0x18f   :  { %v265_v29 = vmul.f32 %v264_v28, %v245_v7 }
 0x191   :  { %v270_v31 = vmul.f32 %v534_v27, %v265_v29 }
 0x193   :  { %v275_v32 = vadd.f32 %v535_v30, %v270_v31 }
 0x195   :  { %v276_v33 = vmax.f32 %v275_v32, 0.0 }
 0x197   :  { %v277_v34 = vpack.c.bf16 %v276_v33, %v276_v33 }
 0x199   :  { %350 = vmatmul.bf16.vlgmr.msra.gmra.mxu2 %v277_v34 }
 0x21c   :  { %v351_v35 = vpop.f32.mrf.mxu2 }
 0x21d   :  { %v355_v36 = vrot.slane %v351_v35, 4 }
 0x21f   :  { %v356_v37 = vadd.f32 %v355_v36, %v351_v35 }
 0x221   :  { %v357_v38 = vrot.slane %v356_v37, 2 }
 0x223   :  { %v358_v39 = vadd.f32 %v357_v38, %v356_v37 }
 0x224   :  { %v353_v40 = vpop.f32.mrf.mxu2 }
 0x225   :  { %v359_v41 = vrot.slane %v358_v39, 1 }
 0x227   :  { %v360_v42 = vadd.f32 %v359_v41, %v358_v39 }
 0x229   :  { %v361_v43 = vmul.f32 %v360_v42, %v665_v25 }
 0x22b   :  { %v362_v44 = vsub.f32 %v351_v35, %v361_v43 }
 0x22d   :  { %v363_v45 = vmul.f32 %v362_v44, %v362_v44 }
 0x22f   :  { %v364_v46 = vrot.slane %v363_v45, 4 }
 0x231   :  { %v365_v47 = vadd.f32 %v364_v46, %v363_v45 }
 0x233   :  { %v366_v48 = vrot.slane %v365_v47, 2 }
 0x235   :  { %v367_v49 = vadd.f32 %v366_v48, %v365_v47 }
 0x237   :  { %v368_v50 = vrot.slane %v367_v49, 1 }
 0x239   :  { %v369_v51 = vadd.f32 %v368_v50, %v367_v49 }
 0x23b   :  { %v370_v52 = vmul.f32 %v369_v51, %v665_v25  ;;  %v537_v25 = vld [vmem:[%s742_s9] ss:$0 sm:$0xff] }
 0x23d   :  { %v371_v53 = vadd.f32 1e-05, %v370_v52 }
 0x23f   :  { %544 = vrsqrt.f32 %v371_v53  ;;  %vm378_vm8 = vweird.f32 %v371_v53 }
 0x245   :  { %v545_v54 = vpop.eup %544 }
 0x246   :  { %v373_v55 = vmul.f32 %v545_v54, %v371_v53  ;;  %vm379_vm7 = vweird.f32 %v545_v54 }
 0x247   :  { %vm380_vm9 = vmor %vm378_vm8, %vm379_vm7 }
 0x248   :  { %v374_v56 = vmul.f32 %v545_v54, %v373_v55 }
 0x24a   :  { %v375_v57 = vmul.f32 0.5, %v374_v56 }
 0x24c   :  { %v376_v58 = vsub.f32 1.5, %v375_v57 }
 0x24e   :  { %v377_v59 = vmul.f32 %v545_v54, %v376_v58 }
 0x250   :  { %v381_v61 = vsel %vm380_vm9, %v545_v54, %v377_v59 }
 0x251   :  { %v382_v62 = vmul.f32 %v381_v61, %v362_v44 }
 0x253   :  { %v387_v63 = vmul.f32 %v536_v60, %v382_v62 }
 0x255   :  { %v392_v0 = vadd.f32 %v537_v25, %v387_v63 }
 0x257   :  { %393 = vst [vmem:[#allocation2] sm:$0xff] %v392_v0 }
 0x258   :  { %404 = dma.vmem_to_hbm [thread:$0]  %s400_s26, 128, %s402_s28, [#allocation3]  }
 0x259   :  { %570 = dma.done.wait [#allocation3], 128  }
 0x25a   :  { %571 = vsyncadd [#allocation3], 4294967168 }
 0x25b   :  { %409 = vsyncpa [#allocation3], 1 }

</bundles_post_ra>
